<compile_context>
chip_gen: v5e
topology: v5e:2x2
jax: 0.10.0
libtpu: 0.0.40
codegen_flags: <defaults>
</compile_context>

<pallas_src>
import functools
import math

import jax
import jax.numpy as jnp
import numpy as np
from jax.experimental import pallas as pl
from jax.experimental.pallas import tpu as pltpu

N_HIDDEN = 16
N_LATENT = 5
N_WINDOW = 5


def _round_up(x, m):
    return ((x + m - 1) // m) * m


# ------------------------------- kernel -------------------------------------

def _usad_kernel(wide_layout, narrow_layout, x_ref, wide_ref, narrow_ref, out_ref):
    # wide_layout / narrow_layout: name -> (row_offset, rows, cols); all offsets are
    # multiples of 8, so every slice below is a free static view.

    def wide(name):
        off, r, _ = wide_layout[name]
        return wide_ref[off:off + r, :]          # full lane-dense width (n_pad)

    def narrow(name):
        off, r, c = narrow_layout[name]
        return narrow_ref[off:off + r, :c]

    def relu(v):
        return jnp.maximum(v, 0.0)

    def dot(a, b):
        return jnp.dot(a, b, preferred_element_type=jnp.float32)

    def dot_bt(a, b):
        # a @ b.T without materializing a transpose (contract last axes of both).
        return jax.lax.dot_general(
            a, b, (((1,), (1,)), ((), ())), preferred_element_type=jnp.float32)

    e_w1 = wide("enc_w1")                                            # (16, n_pad)
    e_b1 = narrow("enc_b1")
    e_w2 = narrow("enc_w2T")
    e_b2 = narrow("enc_b2")
    e_w3 = narrow("enc_w3T")
    e_b3 = narrow("enc_b3")

    def encoder(v):                                                  # (m, n_pad) -> (m, 5)
        h = relu(dot_bt(v, e_w1) + e_b1)
        h = relu(dot(h, e_w2) + e_b2)
        return relu(dot(h, e_w3) + e_b3)

    def decoder(v, p):                                               # (m, 5) -> (m, n_pad)
        h = relu(dot(v, narrow(p + "_w1T")) + narrow(p + "_b1"))
        h = relu(dot(h, narrow(p + "_w2T")) + narrow(p + "_b2"))
        return jax.nn.sigmoid(dot(h, wide(p + "_w3T")) + wide(p + "_b3"))

    x = x_ref[...]                                                   # (1, n_pad)

    z = encoder(x)                                                   # (1, 5)
    ae1 = decoder(z, "d1")                                           # (1, n_pad)
    ae2 = decoder(z, "d2")        # independent of the ae1 chain -> free interleave
    ae2ae1 = decoder(encoder(ae1), "d2")                             # (1, n_pad)

    out_ref[0:1, :] = ae1
    out_ref[1:2, :] = ae2
    out_ref[2:3, :] = ae2ae1


# ------------------------------ params / packing -----------------------------

def init_params(key, feats, n_window=N_WINDOW, n_hidden=N_HIDDEN, n_latent=N_LATENT):
    """Deterministic synthetic init mirroring nn.Linear defaults (PyTorch shapes)."""
    n = feats * n_window
    ks = iter(jax.random.split(key, 36))

    def lin(d_in, d_out):
        bound = 1.0 / math.sqrt(d_in)
        w = jax.random.uniform(next(ks), (d_out, d_in), jnp.float32, -bound, bound)
        b = jax.random.uniform(next(ks), (d_out,), jnp.float32, -bound, bound)
        return w, b

    p = {}
    p["enc_w1"], p["enc_b1"] = lin(n, n_hidden)
    p["enc_w2"], p["enc_b2"] = lin(n_hidden, n_hidden)
    p["enc_w3"], p["enc_b3"] = lin(n_hidden, n_latent)
    p["d1_w1"], p["d1_b1"] = lin(n_latent, n_hidden)
    p["d1_w2"], p["d1_b2"] = lin(n_hidden, n_hidden)
    p["d1_w3"], p["d1_b3"] = lin(n_hidden, n)
    p["d2_w1"], p["d2_b1"] = lin(n_latent, n_hidden)
    p["d2_w2"], p["d2_b2"] = lin(n_hidden, n_hidden)
    p["d2_w3"], p["d2_b3"] = lin(n_hidden, n)
    return p


def _build_slab(entries, width):
    """Stack (name, 2-D array) blocks into one slab; rows padded to multiples of 8,
    columns zero-padded to `width`.  Returns (slab, {name: (offset, rows, cols)})."""
    blocks, layout, off = [], {}, 0
    for name, t in entries:
        t = jnp.asarray(t, jnp.float32)
        r, c = int(t.shape[0]), int(t.shape[1])
        rp = _round_up(r, 8)
        blocks.append(jnp.pad(t, ((0, rp - r), (0, width - c))))
        layout[name] = (off, r, c)
        off += rp
    return jnp.concatenate(blocks, axis=0), layout


def pack_params(params, feats, n_window=N_WINDOW):
    """Pack parameters once (outside the forward).  Wide slab is O(n*16) bytes."""
    n = feats * n_window
    n_pad = _round_up(n, 128)

    wide_entries = [
        ("enc_w1", params["enc_w1"]),            # (16, n), kept un-transposed
        ("d1_w3T", params["d1_w3"].T),           # (16, n)
        ("d2_w3T", params["d2_w3"].T),           # (16, n)
        ("d1_b3", params["d1_b3"][None, :]),     # (1, n)
        ("d2_b3", params["d2_b3"][None, :]),     # (1, n)
    ]
    narrow_entries = [
        ("enc_b1", params["enc_b1"][None, :]),
        ("enc_w2T", params["enc_w2"].T),
        ("enc_b2", params["enc_b2"][None, :]),
        ("enc_w3T", params["enc_w3"].T),
        ("enc_b3", params["enc_b3"][None, :]),
        ("d1_w1T", params["d1_w1"].T),
        ("d1_b1", params["d1_b1"][None, :]),
        ("d1_w2T", params["d1_w2"].T),
        ("d1_b2", params["d1_b2"][None, :]),
        ("d2_w1T", params["d2_w1"].T),
        ("d2_b1", params["d2_b1"][None, :]),
        ("d2_w2T", params["d2_w2"].T),
        ("d2_b2", params["d2_b2"][None, :]),
    ]
    wide_slab, wide_layout = _build_slab(wide_entries, n_pad)
    narrow_slab, narrow_layout = _build_slab(narrow_entries, 128)
    return (wide_slab, narrow_slab), (wide_layout, narrow_layout)


# ------------------------------- forward -------------------------------------

def make_usad_forward(feats, layouts, n_window=N_WINDOW):
    n = feats * n_window
    n_pad = _round_up(n, 128)
    wide_layout, narrow_layout = layouts
    kernel = functools.partial(_usad_kernel, wide_layout, narrow_layout)
    vmem = pltpu.MemorySpace.VMEM

    @jax.jit
    def forward(g, wide_slab, narrow_slab):
        # matches g.view(1, -1)
        x = jnp.reshape(g, (1, n)).astype(jnp.float32)
        x = jnp.pad(x, ((0, 0), (0, n_pad - n)))            # lane-dense input

        out = pl.pallas_call(
            kernel,
            in_specs=[
                pl.BlockSpec(memory_space=vmem),             # input vector
                pl.BlockSpec(memory_space=vmem),             # wide param slab
                pl.BlockSpec(memory_space=vmem),             # narrow param slab
            ],
            out_specs=pl.BlockSpec(memory_space=vmem),
            out_shape=jax.ShapeDtypeStruct((3, n_pad), jnp.float32),
        )(x, wide_slab, narrow_slab)

        # rows: 0 -> ae1, 1 -> ae2, 2 -> ae2ae1
        return out[0, :n], out[1, :n], out[2, :n]

    return forward


# ------------------------------ reference ------------------------------------

def _usad_reference(g, params):
    x = jnp.reshape(g, (1, -1)).astype(jnp.float32)

    def enc(v):
        h = jax.nn.relu(v @ params["enc_w1"].T + params["enc_b1"])
        h = jax.nn.relu(h @ params["enc_w2"].T + params["enc_b2"])
        return jax.nn.relu(h @ params["enc_w3"].T + params["enc_b3"])

    def dec(v, p):
        h = jax.nn.relu(v @ params[p + "_w1"].T + params[p + "_b1"])
        h = jax.nn.relu(h @ params[p + "_w2"].T + params[p + "_b2"])
        return jax.nn.sigmoid(h @ params[p + "_w3"].T + params[p + "_b3"])

    z = enc(x)
    ae1 = dec(z, "d1")
    ae2 = dec(z, "d2")
    ae2ae1 = dec(enc(ae1), "d2")
    return ae1.reshape(-1), ae2.reshape(-1), ae2ae1.reshape(-1)


# --------------------------------- main ---------------------------------------

if __name__ == "__main__":
    feats = 8                       # n = feats * 5 = 40
    key = jax.random.PRNGKey(0)
    k_g, k_p = jax.random.split(key)

    g = jax.random.uniform(k_g, (N_WINDOW, feats), jnp.float32)   # one window
    params = init_params(k_p, feats)

    # Pack once (outside the forward / jit), reuse across calls.
    (wide_slab, narrow_slab), layouts = pack_params(params, feats)
    usad_forward = make_usad_forward(feats, layouts)

    ae1, ae2, ae2ae1 = usad_forward(g, wide_slab, narrow_slab)
    jax.block_until_ready((ae1, ae2, ae2ae1))

    n = feats * N_WINDOW
    assert ae1.shape == (n,) and ae2.shape == (n,) and ae2ae1.shape == (n,)

    # Pure-JAX reference for correctness.
    r1, r2, r3 = _usad_reference(g, params)
    np.testing.assert_allclose(np.asarray(ae1), np.asarray(r1), rtol=2e-4, atol=2e-4)
    np.testing.assert_allclose(np.asarray(ae2), np.asarray(r2), rtol=2e-4, atol=2e-4)
    np.testing.assert_allclose(np.asarray(ae2ae1), np.asarray(r3), rtol=2e-4, atol=2e-4)

    print("KERNEL_OK")
</pallas_src>

<mosaic_0001>
module attributes {stable_mosaic.version = 11 : i64} {
  func.func @_usad_kernel(%arg0: memref<1x128xf32, #tpu.memory_space<vmem>>, %arg1: memref<64x128xf32, #tpu.memory_space<vmem>>, %arg2: memref<136x128xf32, #tpu.memory_space<vmem>>, %arg3: memref<3x128xf32, #tpu.memory_space<vmem>>) attributes {dimension_semantics = [], scalar_prefetch = 0 : i64, scratch_operands = 0 : i64, tpu.core_type = #tpu.core_type<tc>} {
    %c0 = arith.constant 0 : index
    %c0_0 = arith.constant 0 : index
    %0 = vector.load %arg1[%c0, %c0_0] : memref<64x128xf32, #tpu.memory_space<vmem>>, vector<16x128xf32>
    %c0_1 = arith.constant 0 : index
    %c0_2 = arith.constant 0 : index
    %1 = vector.load %arg2[%c0_1, %c0_2] : memref<136x128xf32, #tpu.memory_space<vmem>>, vector<1x16xf32>
    %c8 = arith.constant 8 : index
    %c0_3 = arith.constant 0 : index
    %2 = vector.load %arg2[%c8, %c0_3] : memref<136x128xf32, #tpu.memory_space<vmem>>, vector<16x16xf32>
    %c24 = arith.constant 24 : index
    %c0_4 = arith.constant 0 : index
    %3 = vector.load %arg2[%c24, %c0_4] : memref<136x128xf32, #tpu.memory_space<vmem>>, vector<1x16xf32>
    %c32 = arith.constant 32 : index
    %c0_5 = arith.constant 0 : index
    %4 = vector.load %arg2[%c32, %c0_5] : memref<136x128xf32, #tpu.memory_space<vmem>>, vector<16x5xf32>
    %c48 = arith.constant 48 : index
    %c0_6 = arith.constant 0 : index
    %5 = vector.load %arg2[%c48, %c0_6] : memref<136x128xf32, #tpu.memory_space<vmem>>, vector<1x5xf32>
    %c0_7 = arith.constant 0 : index
    %c0_8 = arith.constant 0 : index
    %6 = vector.load %arg0[%c0_7, %c0_8] : memref<1x128xf32, #tpu.memory_space<vmem>>, vector<1x128xf32>
    %cst = arith.constant dense<0.000000e+00> : vector<1x16xf32>
    %7 = tpu.matmul %6, %0, %cst {dimension_numbers = #tpu.dot_dimension_numbers<[1], [1], [0], [0], [0, 0, 1, 0], [], []>} : vector<1x128xf32>, vector<16x128xf32>, vector<1x16xf32> -> vector<1x16xf32>
    %8 = arith.addf %7, %1 : vector<1x16xf32>
    %cst_9 = arith.constant 0.000000e+00 : f32
    %9 = vector.broadcast %cst_9 : f32 to vector<1x16xf32>
    %10 = arith.maximumf %8, %9 : vector<1x16xf32>
    %cst_10 = arith.constant dense<0.000000e+00> : vector<1x16xf32>
    %11 = tpu.matmul %10, %2, %cst_10 {dimension_numbers = #tpu.dot_dimension_numbers<[1], [0], [0], [1], [0, 0, 1, 1], [], []>} : vector<1x16xf32>, vector<16x16xf32>, vector<1x16xf32> -> vector<1x16xf32>
    %12 = arith.addf %11, %3 : vector<1x16xf32>
    %cst_11 = arith.constant 0.000000e+00 : f32
    %13 = vector.broadcast %cst_11 : f32 to vector<1x16xf32>
    %14 = arith.maximumf %12, %13 : vector<1x16xf32>
    %cst_12 = arith.constant dense<0.000000e+00> : vector<1x5xf32>
    %15 = tpu.matmul %14, %4, %cst_12 {dimension_numbers = #tpu.dot_dimension_numbers<[1], [0], [0], [1], [0, 0, 1, 1], [], []>} : vector<1x16xf32>, vector<16x5xf32>, vector<1x5xf32> -> vector<1x5xf32>
    %16 = arith.addf %15, %5 : vector<1x5xf32>
    %cst_13 = arith.constant 0.000000e+00 : f32
    %17 = vector.broadcast %cst_13 : f32 to vector<1x5xf32>
    %18 = arith.maximumf %16, %17 : vector<1x5xf32>
    %c56 = arith.constant 56 : index
    %c0_14 = arith.constant 0 : index
    %19 = vector.load %arg2[%c56, %c0_14] : memref<136x128xf32, #tpu.memory_space<vmem>>, vector<5x16xf32>
    %cst_15 = arith.constant dense<0.000000e+00> : vector<1x16xf32>
    %20 = tpu.matmul %18, %19, %cst_15 {dimension_numbers = #tpu.dot_dimension_numbers<[1], [0], [0], [1], [0, 0, 1, 1], [], []>} : vector<1x5xf32>, vector<5x16xf32>, vector<1x16xf32> -> vector<1x16xf32>
    %c64 = arith.constant 64 : index
    %c0_16 = arith.constant 0 : index
    %21 = vector.load %arg2[%c64, %c0_16] : memref<136x128xf32, #tpu.memory_space<vmem>>, vector<1x16xf32>
    %22 = arith.addf %20, %21 : vector<1x16xf32>
    %cst_17 = arith.constant 0.000000e+00 : f32
    %23 = vector.broadcast %cst_17 : f32 to vector<1x16xf32>
    %24 = arith.maximumf %22, %23 : vector<1x16xf32>
    %c72 = arith.constant 72 : index
    %c0_18 = arith.constant 0 : index
    %25 = vector.load %arg2[%c72, %c0_18] : memref<136x128xf32, #tpu.memory_space<vmem>>, vector<16x16xf32>
    %cst_19 = arith.constant dense<0.000000e+00> : vector<1x16xf32>
    %26 = tpu.matmul %24, %25, %cst_19 {dimension_numbers = #tpu.dot_dimension_numbers<[1], [0], [0], [1], [0, 0, 1, 1], [], []>} : vector<1x16xf32>, vector<16x16xf32>, vector<1x16xf32> -> vector<1x16xf32>
    %c88 = arith.constant 88 : index
    %c0_20 = arith.constant 0 : index
    %27 = vector.load %arg2[%c88, %c0_20] : memref<136x128xf32, #tpu.memory_space<vmem>>, vector<1x16xf32>
    %28 = arith.addf %26, %27 : vector<1x16xf32>
    %cst_21 = arith.constant 0.000000e+00 : f32
    %29 = vector.broadcast %cst_21 : f32 to vector<1x16xf32>
    %30 = arith.maximumf %28, %29 : vector<1x16xf32>
    %c16 = arith.constant 16 : index
    %c0_22 = arith.constant 0 : index
    %31 = vector.load %arg1[%c16, %c0_22] : memref<64x128xf32, #tpu.memory_space<vmem>>, vector<16x128xf32>
    %cst_23 = arith.constant dense<0.000000e+00> : vector<1x128xf32>
    %32 = tpu.matmul %30, %31, %cst_23 {dimension_numbers = #tpu.dot_dimension_numbers<[1], [0], [0], [1], [0, 0, 1, 1], [], []>} : vector<1x16xf32>, vector<16x128xf32>, vector<1x128xf32> -> vector<1x128xf32>
    %c48_24 = arith.constant 48 : index
    %c0_25 = arith.constant 0 : index
    %33 = vector.load %arg1[%c48_24, %c0_25] : memref<64x128xf32, #tpu.memory_space<vmem>>, vector<1x128xf32>
    %34 = arith.addf %32, %33 : vector<1x128xf32>
    %35 = arith.negf %34 : vector<1x128xf32>
    %36 = math.exp %35 : vector<1x128xf32>
    %cst_26 = arith.constant 1.000000e+00 : f32
    %37 = vector.broadcast %cst_26 : f32 to vector<1x128xf32>
    %38 = arith.addf %37, %36 : vector<1x128xf32>
    %39 = arith.divf %37, %38 : vector<1x128xf32>
    %c96 = arith.constant 96 : index
    %c0_27 = arith.constant 0 : index
    %40 = vector.load %arg2[%c96, %c0_27] : memref<136x128xf32, #tpu.memory_space<vmem>>, vector<5x16xf32>
    %cst_28 = arith.constant dense<0.000000e+00> : vector<1x16xf32>
    %41 = tpu.matmul %18, %40, %cst_28 {dimension_numbers = #tpu.dot_dimension_numbers<[1], [0], [0], [1], [0, 0, 1, 1], [], []>} : vector<1x5xf32>, vector<5x16xf32>, vector<1x16xf32> -> vector<1x16xf32>
    %c104 = arith.constant 104 : index
    %c0_29 = arith.constant 0 : index
    %42 = vector.load %arg2[%c104, %c0_29] : memref<136x128xf32, #tpu.memory_space<vmem>>, vector<1x16xf32>
    %43 = arith.addf %41, %42 : vector<1x16xf32>
    %cst_30 = arith.constant 0.000000e+00 : f32
    %44 = vector.broadcast %cst_30 : f32 to vector<1x16xf32>
    %45 = arith.maximumf %43, %44 : vector<1x16xf32>
    %c112 = arith.constant 112 : index
    %c0_31 = arith.constant 0 : index
    %46 = vector.load %arg2[%c112, %c0_31] : memref<136x128xf32, #tpu.memory_space<vmem>>, vector<16x16xf32>
    %cst_32 = arith.constant dense<0.000000e+00> : vector<1x16xf32>
    %47 = tpu.matmul %45, %46, %cst_32 {dimension_numbers = #tpu.dot_dimension_numbers<[1], [0], [0], [1], [0, 0, 1, 1], [], []>} : vector<1x16xf32>, vector<16x16xf32>, vector<1x16xf32> -> vector<1x16xf32>
    %c128 = arith.constant 128 : index
    %c0_33 = arith.constant 0 : index
    %48 = vector.load %arg2[%c128, %c0_33] : memref<136x128xf32, #tpu.memory_space<vmem>>, vector<1x16xf32>
    %49 = arith.addf %47, %48 : vector<1x16xf32>
    %cst_34 = arith.constant 0.000000e+00 : f32
    %50 = vector.broadcast %cst_34 : f32 to vector<1x16xf32>
    %51 = arith.maximumf %49, %50 : vector<1x16xf32>
    %c32_35 = arith.constant 32 : index
    %c0_36 = arith.constant 0 : index
    %52 = vector.load %arg1[%c32_35, %c0_36] : memref<64x128xf32, #tpu.memory_space<vmem>>, vector<16x128xf32>
    %cst_37 = arith.constant dense<0.000000e+00> : vector<1x128xf32>
    %53 = tpu.matmul %51, %52, %cst_37 {dimension_numbers = #tpu.dot_dimension_numbers<[1], [0], [0], [1], [0, 0, 1, 1], [], []>} : vector<1x16xf32>, vector<16x128xf32>, vector<1x128xf32> -> vector<1x128xf32>
    %c56_38 = arith.constant 56 : index
    %c0_39 = arith.constant 0 : index
    %54 = vector.load %arg1[%c56_38, %c0_39] : memref<64x128xf32, #tpu.memory_space<vmem>>, vector<1x128xf32>
    %55 = arith.addf %53, %54 : vector<1x128xf32>
    %56 = arith.negf %55 : vector<1x128xf32>
    %57 = math.exp %56 : vector<1x128xf32>
    %cst_40 = arith.constant 1.000000e+00 : f32
    %58 = vector.broadcast %cst_40 : f32 to vector<1x128xf32>
    %59 = arith.addf %58, %57 : vector<1x128xf32>
    %60 = arith.divf %58, %59 : vector<1x128xf32>
    %cst_41 = arith.constant dense<0.000000e+00> : vector<1x16xf32>
    %61 = tpu.matmul %39, %0, %cst_41 {dimension_numbers = #tpu.dot_dimension_numbers<[1], [1], [0], [0], [0, 0, 1, 0], [], []>} : vector<1x128xf32>, vector<16x128xf32>, vector<1x16xf32> -> vector<1x16xf32>
    %62 = arith.addf %61, %1 : vector<1x16xf32>
    %cst_42 = arith.constant 0.000000e+00 : f32
    %63 = vector.broadcast %cst_42 : f32 to vector<1x16xf32>
    %64 = arith.maximumf %62, %63 : vector<1x16xf32>
    %cst_43 = arith.constant dense<0.000000e+00> : vector<1x16xf32>
    %65 = tpu.matmul %64, %2, %cst_43 {dimension_numbers = #tpu.dot_dimension_numbers<[1], [0], [0], [1], [0, 0, 1, 1], [], []>} : vector<1x16xf32>, vector<16x16xf32>, vector<1x16xf32> -> vector<1x16xf32>
    %66 = arith.addf %65, %3 : vector<1x16xf32>
    %cst_44 = arith.constant 0.000000e+00 : f32
    %67 = vector.broadcast %cst_44 : f32 to vector<1x16xf32>
    %68 = arith.maximumf %66, %67 : vector<1x16xf32>
    %cst_45 = arith.constant dense<0.000000e+00> : vector<1x5xf32>
    %69 = tpu.matmul %68, %4, %cst_45 {dimension_numbers = #tpu.dot_dimension_numbers<[1], [0], [0], [1], [0, 0, 1, 1], [], []>} : vector<1x16xf32>, vector<16x5xf32>, vector<1x5xf32> -> vector<1x5xf32>
    %70 = arith.addf %69, %5 : vector<1x5xf32>
    %cst_46 = arith.constant 0.000000e+00 : f32
    %71 = vector.broadcast %cst_46 : f32 to vector<1x5xf32>
    %72 = arith.maximumf %70, %71 : vector<1x5xf32>
    %c96_47 = arith.constant 96 : index
    %c0_48 = arith.constant 0 : index
    %73 = vector.load %arg2[%c96_47, %c0_48] : memref<136x128xf32, #tpu.memory_space<vmem>>, vector<5x16xf32>
    %cst_49 = arith.constant dense<0.000000e+00> : vector<1x16xf32>
    %74 = tpu.matmul %72, %73, %cst_49 {dimension_numbers = #tpu.dot_dimension_numbers<[1], [0], [0], [1], [0, 0, 1, 1], [], []>} : vector<1x5xf32>, vector<5x16xf32>, vector<1x16xf32> -> vector<1x16xf32>
    %c104_50 = arith.constant 104 : index
    %c0_51 = arith.constant 0 : index
    %75 = vector.load %arg2[%c104_50, %c0_51] : memref<136x128xf32, #tpu.memory_space<vmem>>, vector<1x16xf32>
    %76 = arith.addf %74, %75 : vector<1x16xf32>
    %cst_52 = arith.constant 0.000000e+00 : f32
    %77 = vector.broadcast %cst_52 : f32 to vector<1x16xf32>
    %78 = arith.maximumf %76, %77 : vector<1x16xf32>
    %c112_53 = arith.constant 112 : index
    %c0_54 = arith.constant 0 : index
    %79 = vector.load %arg2[%c112_53, %c0_54] : memref<136x128xf32, #tpu.memory_space<vmem>>, vector<16x16xf32>
    %cst_55 = arith.constant dense<0.000000e+00> : vector<1x16xf32>
    %80 = tpu.matmul %78, %79, %cst_55 {dimension_numbers = #tpu.dot_dimension_numbers<[1], [0], [0], [1], [0, 0, 1, 1], [], []>} : vector<1x16xf32>, vector<16x16xf32>, vector<1x16xf32> -> vector<1x16xf32>
    %c128_56 = arith.constant 128 : index
    %c0_57 = arith.constant 0 : index
    %81 = vector.load %arg2[%c128_56, %c0_57] : memref<136x128xf32, #tpu.memory_space<vmem>>, vector<1x16xf32>
    %82 = arith.addf %80, %81 : vector<1x16xf32>
    %cst_58 = arith.constant 0.000000e+00 : f32
    %83 = vector.broadcast %cst_58 : f32 to vector<1x16xf32>
    %84 = arith.maximumf %82, %83 : vector<1x16xf32>
    %c32_59 = arith.constant 32 : index
    %c0_60 = arith.constant 0 : index
    %85 = vector.load %arg1[%c32_59, %c0_60] : memref<64x128xf32, #tpu.memory_space<vmem>>, vector<16x128xf32>
    %cst_61 = arith.constant dense<0.000000e+00> : vector<1x128xf32>
    %86 = tpu.matmul %84, %85, %cst_61 {dimension_numbers = #tpu.dot_dimension_numbers<[1], [0], [0], [1], [0, 0, 1, 1], [], []>} : vector<1x16xf32>, vector<16x128xf32>, vector<1x128xf32> -> vector<1x128xf32>
    %c56_62 = arith.constant 56 : index
    %c0_63 = arith.constant 0 : index
    %87 = vector.load %arg1[%c56_62, %c0_63] : memref<64x128xf32, #tpu.memory_space<vmem>>, vector<1x128xf32>
    %88 = arith.addf %86, %87 : vector<1x128xf32>
    %89 = arith.negf %88 : vector<1x128xf32>
    %90 = math.exp %89 : vector<1x128xf32>
    %cst_64 = arith.constant 1.000000e+00 : f32
    %91 = vector.broadcast %cst_64 : f32 to vector<1x128xf32>
    %92 = arith.addf %91, %90 : vector<1x128xf32>
    %93 = arith.divf %91, %92 : vector<1x128xf32>
    %c0_65 = arith.constant 0 : index
    %c0_66 = arith.constant 0 : index
    %94 = vector.load %arg3[%c0_65, %c0_66] : memref<3x128xf32, #tpu.memory_space<vmem>>, vector<1x128xf32>
    tpu.vector_store %arg3[%c0_65, %c0_66], %39 {strides = array<i32>} : memref<3x128xf32, #tpu.memory_space<vmem>>, vector<1x128xf32>,
    %c1 = arith.constant 1 : index
    %c0_67 = arith.constant 0 : index
    %95 = vector.load %arg3[%c1, %c0_67] : memref<3x128xf32, #tpu.memory_space<vmem>>, vector<1x128xf32>
    tpu.vector_store %arg3[%c1, %c0_67], %60 {strides = array<i32>} : memref<3x128xf32, #tpu.memory_space<vmem>>, vector<1x128xf32>,
    %c2 = arith.constant 2 : index
    %c0_68 = arith.constant 0 : index
    %96 = vector.load %arg3[%c2, %c0_68] : memref<3x128xf32, #tpu.memory_space<vmem>>, vector<1x128xf32>
    tpu.vector_store %arg3[%c2, %c0_68], %93 {strides = array<i32>} : memref<3x128xf32, #tpu.memory_space<vmem>>, vector<1x128xf32>,
    return
  }
}

</mosaic_0001>

<bundles_post_ra>
// kernel: forward.1
= control target key start
LH: loop header
LB: loop body
LE: loop exit
PB: predicated region body
PF: predicated region fallthrough
CT: control target
= control target key end

     0   :  { %8 = vsyncpa [#allocation3], 0  ;;  %s672_s0 = inlined_call_operand.vmem [shape: f32[1,128], index: 0, kind: input, shape index: {}]   ;;  %s673_s1 = inlined_call_operand.hbm [shape: f32[64,128], index: 1, kind: input, shape index: {}]   ;;  %s674_s2 = inlined_call_operand.hbm [shape: f32[136,128], index: 2, kind: input, shape index: {}]   ;;  %s675_s3 = inlined_call_operand.vmem [shape: f32[3,128], index: 3, kind: output, shape index: {}]  }
   0x1   :  { %s16_s14 = sshll.u32 %s673_s1, 4  ;;  %s17_s14 = int_to_ptr.hbm [resolvable:$true] %s16_s14 }
   0x2   :  { %9 = vsyncpa [#allocation5], 0  ;;  %s582_s15 = smov [#allocation2]   ;;  %s29_s19 = sshll.u32 %s674_s2, 4  ;;  %s30_s19 = int_to_ptr.hbm [resolvable:$true] %s29_s19 }
   0x3   :  { %s18_s16 = sshll.u32 %s582_s15, 4  ;;  %s583_s20 = smov 128   ;;  %s19_s16 = int_to_ptr.vmem [resolvable:$true] %s18_s16 }
   0x4   :  { %s584_s21 = smov 8   ;;  %s585_s22 = smov [#allocation4]  }
   0x5   :  { %24 = dma.hbm_to_vmem [thread:$0]  %s17_s14, 1024, %s19_s16, [#allocation3], %s583_s20, %s583_s20, %s584_s21  }
   0x6   :  { %s31_s23 = sshll.u32 %s585_s22, 4  ;;  %s32_s23 = int_to_ptr.vmem [resolvable:$true] %s31_s23 }
   0x7   :  { %37 = dma.hbm_to_vmem [thread:$0]  %s30_s19, 2176, %s32_s23, [#allocation5], %s583_s20, %s583_s20, %s584_s21  }
   0x8   :  { %578 = dma.done.wait [#allocation3], 1024  }
   0x9   :  { %579 = vsyncadd [#allocation3], 4294966272 }
   0xa   :  { %580 = dma.done.wait [#allocation5], 2176  }
   0xb   :  { %581 = vsyncadd [#allocation5], 4294965120  ;;  %v612_v0 = vld [vmem:[#allocation2 + $0x8] sm:$0xff]  ;;  %v615_v1 = vld [vmem:[#allocation2] sm:$0xff]  ;;  %vm77_vm0 = vcmask 130048   ;;  %vm132_vm1 = vcmask 1044480  }
   0xc   :  { %70 = vmatpush.xpose.msra.mxu0 %v612_v0  ;;  %v55_v2 = vld [vmem:[%s672_s0] sm:$0x1]  ;;  %v50_v3 = vld [vmem:[#allocation4 + $0x10] sm:$0xff]  ;;  %v49_v4 = vld [vmem:[#allocation4 + $0x8] sm:$0xff]  ;;  %vm128_vm2 = vcmask 39936  }
   0xd   :  { %95 = vmatpush.msra.mxu1 %v50_v3  ;;  %v621_v5 = vld [vmem:[#allocation4] sm:$0x1]  ;;  %v53_v9 = vld [vmem:[#allocation4 + $0x28] sm:$0xff]  ;;  %v625_v11 = vld [vmem:[#allocation4 + $0x18] sm:$0x1] }
   0xe   :  { %119 = vmatpush.msra.mxu2 %v53_v9  ;;  %v52_v10 = vld [vmem:[#allocation4 + $0x20] sm:$0xff]  ;;  %v126_v15 = vld [vmem:[#allocation4 + $0x38] sm:$0x1f]  ;;  %v158_v17 = vld [vmem:[#allocation4 + $0x50] sm:$0xff] }
   0xf   :  { %96 = vmatpush.msra.mxu1 %v49_v4  ;;  %v229_v16 = vld [vmem:[#allocation4 + $0x60] sm:$0x1f]  ;;  %497 = vmatpush.msk.msra.mxu3 %vm132_vm1, %v126_v15  ;;  %v631_v18 = vld [vmem:[#allocation4 + $0x30] sm:$0x1]  ;;  %v256_v22 = vld [vmem:[#allocation4 + $0x78] sm:$0xff] }
  0x10   :  { %71 = vmatpush.xpose.msra.mxu0 %v615_v1  ;;  %120 = vmatpush.msra.mxu2 %v52_v10  ;;  %v157_v23 = vld [vmem:[#allocation4 + $0x48] sm:$0xff]  ;;  %v255_v24 = vld [vmem:[#allocation4 + $0x70] sm:$0xff]  ;;  %v127_v25 = vld [vmem:[#allocation4 + $0x40] sm:$0x1] }
  0x11   :  { %177 = vmatpush.msrb.mxu3 %v158_v17  ;;  %v636_v26 = vld [vmem:[#allocation4 + $0x68] sm:$0x1]  ;;  %v185_v34 = vld [vmem:[#allocation2 + $0x18] sm:$0xff]  ;;  %v282_v35 = vld [vmem:[#allocation2 + $0x20] sm:$0xff] }
  0x12   :  { %502 = vmatpush.msk.msrb.mxu2 %vm132_vm1, %v229_v16  ;;  %v283_v33 = vld [vmem:[#allocation2 + $0x28] sm:$0xff]  ;;  %204 = vmatpush.msrb.mxu1 %v185_v34  ;;  %v184_v36 = vld [vmem:[#allocation2 + $0x10] sm:$0xff]  ;;  %v644_v37 = vld [vmem:[#allocation4 + $0x80] sm:$0x1] }
  0x13   :  { %72 = vmatmul.f32.vlgmr.msra.gmra.mxu0 %v55_v2  ;;  %178 = vmatpush.msrb.mxu3 %v157_v23  ;;  %v159_v41 = vld [vmem:[#allocation4 + $0x58] sm:$0x1]  ;;  %v186_v45 = vld [vmem:[#allocation2 + $0x30] sm:$0x1] }
  0x14   :  { %275 = vmatpush.msrb.mxu0 %v256_v22  ;;  %205 = vmatpush.msrb.mxu1 %v184_v36  ;;  %v649_v46 = vld [vmem:[#allocation2 + $0x38] sm:$0x1] }
  0x16   :  { %276 = vmatpush.msrb.mxu0 %v255_v24 }
  0x18   :  { %389 = vmatpush.msra.mxu0 %v53_v9 }
  0x1a   :  { %390 = vmatpush.msra.mxu0 %v52_v10 }
  0x90   :  { %v73_v6 = vpop.f32.mrf.mxu0 }
  0x91   :  { %v74_v7 = vadd.f32 %v73_v6, %v621_v5 }
  0x93   :  { %v76_v8 = vmax.f32 %v74_v7, 0.0 }
  0x95   :  { %495 = vmatmul.msk.f32.vlgmr.msra.gmra.mxu1 %vm77_vm0, %v76_v8 }
  0x96   :  { %341 = vmatpush.xpose.msra.mxu1 %v612_v0 }
  0x9a   :  { %342 = vmatpush.xpose.msra.mxu1 %v615_v1 }
 0x112   :  { %v98_v12 = vpop.f32.mrf.mxu1 }
 0x113   :  { %v99_v13 = vadd.f32 %v98_v12, %v625_v11 }
 0x115   :  { %v101_v14 = vmax.f32 %v99_v13, 0.0 }
 0x117   :  { %496 = vmatmul.msk.f32.vlgmr.msra.gmra.mxu2 %vm77_vm0, %v101_v14 }
 0x118   :  { %365 = vmatpush.msra.mxu2 %v50_v3 }
 0x11a   :  { %366 = vmatpush.msra.mxu2 %v49_v4 }
 0x19a   :  { %v122_v19 = vpop.f32.mrf.mxu2 }
 0x19b   :  { %v123_v20 = vadd.f32 %v122_v19, %v631_v18 }
 0x19d   :  { %v125_v21 = vmax.f32 %v123_v20, 0.0 }
 0x19f   :  { %498 = vmatmul.msk.f32.vlgmr.msra.gmra.mxu3 %vm128_vm2, %v125_v21  ;;  %503 = vmatmul.msk.f32.vlgmr.msrb.gmra.mxu2 %vm128_vm2, %v125_v21 }
 0x1a0   :  { %302 = vmatpush.msra.mxu3 %v283_v33  ;;  %461 = vmatpush.msrb.mxu2 %v283_v33 }
 0x1a2   :  { %303 = vmatpush.msra.mxu3 %v282_v35  ;;  %462 = vmatpush.msrb.mxu2 %v282_v35 }
 0x222   :  { %v153_v27 = vpop.f32.mrf.mxu3  ;;  %v251_v28 = vpop.f32.mrf.mxu2 }
 0x223   :  { %v154_v29 = vadd.f32 %v153_v27, %v127_v25  ;;  %v252_v30 = vadd.f32 %v251_v28, %v636_v26 }
 0x225   :  { %v156_v31 = vmax.f32 %v154_v29, 0.0  ;;  %v254_v32 = vmax.f32 %v252_v30, 0.0 }
 0x227   :  { %499 = vmatmul.msk.f32.vlgmr.msrb.gmra.mxu3 %vm77_vm0, %v156_v31  ;;  %504 = vmatmul.msk.f32.vlgmr.msrb.gmra.mxu0 %vm77_vm0, %v254_v32 }
 0x228   :  { %509 = vmatpush.msk.msrb.mxu3 %vm132_vm1, %v229_v16 }
 0x2a4   :  { %v278_v38 = vpop.f32.mrf.mxu0 }
 0x2a5   :  { %v279_v39 = vadd.f32 %v278_v38, %v644_v37 }
 0x2a7   :  { %v281_v40 = vmax.f32 %v279_v39, 0.0 }
 0x2a9   :  { %505 = vmatmul.msk.f32.vlgmr.msra.gmra.mxu3 %vm77_vm0, %v281_v40 }
 0x2aa   :  { %v180_v42 = vpop.f32.mrf.mxu3 }
 0x2ab   :  { %v181_v43 = vadd.f32 %v180_v42, %v159_v41 }
 0x2ad   :  { %v183_v44 = vmax.f32 %v181_v43, 0.0 }
 0x2af   :  { %500 = vmatmul.msk.f32.vlgmr.msrb.gmra.mxu1 %vm77_vm0, %v183_v44 }
 0x2b0   :  { %437 = vmatpush.msrb.mxu1 %v256_v22 }
 0x2b2   :  { %438 = vmatpush.msrb.mxu1 %v255_v24 }
 0x32c   :  { %v207_v47 = vpop.f32.mrf.mxu1  ;;  %v305_v48 = vpop.f32.mrf.mxu3 }
 0x32d   :  { %v208_v49 = vadd.f32 %v207_v47, %v186_v45  ;;  %v306_v50 = vadd.f32 %v305_v48, %v649_v46 }
 0x32f   :  { %v501_v51 = vmul.f32 -1.442695, %v208_v49  ;;  %v506_v52 = vmul.f32 -1.442695, %v306_v50 }
 0x331   :  { %518 = vpow2.f32 %v501_v51 }
 0x332   :  { %520 = vpow2.f32 %v506_v52 }
 0x337   :  { %v519_v53 = vpop.eup %518 }
 0x338   :  { %v521_v54 = vpop.eup %520  ;;  %v213_v55 = vadd.f32 1.0, %v519_v53 }
 0x339   :  { %v311_v56 = vadd.f32 1.0, %v521_v54 }
 0x33a   :  { %522 = vrcp.f32 %v213_v55  ;;  %v225_v63 = vand.u32 2147483648, %v213_v55  ;;  %v223_v2 = vand.u32 2147483647, %v213_v55  ;;  %vm219_vm5 = vweird.f32 %v213_v55 }
 0x33b   :  { %524 = vrcp.f32 %v311_v56  ;;  %v323_v0 = vand.u32 2147483648, %v311_v56  ;;  %v321_v4 = vand.u32 2147483647, %v311_v56  ;;  %vm317_vm6 = vweird.f32 %v311_v56 }
 0x33c   :  { %v226_v8 = vor.u32 1.1754944e-38, %v225_v63  ;;  %vm224_vm9 = vcmp.eq.f32.partialorder %v223_v2, 8.507059e+37 }
 0x33d   :  { %v324_v9 = vor.u32 1.1754944e-38, %v323_v0  ;;  %vm322_vm10 = vcmp.eq.f32.partialorder %v321_v4, 8.507059e+37 }
 0x340   :  { %v523_v57 = vpop.eup %522 }
 0x341   :  { %v525_v58 = vpop.eup %524  ;;  %v215_v59 = vmul.f32 %v523_v57, %v213_v55  ;;  %vm220_vm3 = vweird.f32 %v523_v57 }
 0x342   :  { %v313_v60 = vmul.f32 %v525_v58, %v311_v56  ;;  %vm318_vm4 = vweird.f32 %v525_v58  ;;  %vm221_vm7 = vmor %vm219_vm5, %vm220_vm3 }
 0x343   :  { %v216_v61 = vsub.f32 1.0, %v215_v59  ;;  %vm319_vm8 = vmor %vm317_vm6, %vm318_vm4 }
 0x344   :  { %v314_v62 = vsub.f32 1.0, %v313_v60 }
 0x345   :  { %v217_v1 = vmul.f32 %v523_v57, %v216_v61 }
 0x346   :  { %v315_v3 = vmul.f32 %v525_v58, %v314_v62 }
 0x347   :  { %v218_v6 = vadd.f32 %v523_v57, %v217_v1 }
 0x348   :  { %v316_v7 = vadd.f32 %v525_v58, %v315_v3 }
 0x349   :  { %v222_v10 = vsel %vm221_vm7, %v523_v57, %v218_v6 }
 0x34a   :  { %v320_v12 = vsel %vm319_vm8, %v525_v58, %v316_v7  ;;  %v227_v13 = vsel %vm224_vm9, %v226_v8, %v222_v10 }
 0x34b   :  { %v325_v14 = vsel %vm322_vm10, %v324_v9, %v320_v12  ;;  %343 = vmatmul.f32.vlgmr.msra.gmra.mxu1 %v227_v13  ;;  %486 = vst [vmem:[%s675_s3] sm:$0x1] %v227_v13 }
 0x34c   :  { %487 = vst [vmem:[%s675_s3 + $0x1] sm:$0x1] %v325_v14 }
 0x3c8   :  { %v344_v15 = vpop.f32.mrf.mxu1 }
 0x3c9   :  { %v345_v16 = vadd.f32 %v344_v15, %v621_v5 }
 0x3cb   :  { %v347_v17 = vmax.f32 %v345_v16, 0.0 }
 0x3cd   :  { %507 = vmatmul.msk.f32.vlgmr.msra.gmra.mxu2 %vm77_vm0, %v347_v17 }
 0x450   :  { %v368_v19 = vpop.f32.mrf.mxu2 }
 0x451   :  { %v369_v20 = vadd.f32 %v368_v19, %v625_v11 }
 0x453   :  { %v371_v21 = vmax.f32 %v369_v20, 0.0 }
 0x455   :  { %508 = vmatmul.msk.f32.vlgmr.msra.gmra.mxu0 %vm77_vm0, %v371_v21 }
 0x4d2   :  { %v392_v22 = vpop.f32.mrf.mxu0 }
 0x4d3   :  { %v393_v23 = vadd.f32 %v392_v22, %v631_v18 }
 0x4d5   :  { %v395_v24 = vmax.f32 %v393_v23, 0.0 }
 0x4d7   :  { %510 = vmatmul.msk.f32.vlgmr.msrb.gmra.mxu3 %vm128_vm2, %v395_v24 }
 0x55a   :  { %v416_v25 = vpop.f32.mrf.mxu3 }
 0x55b   :  { %v417_v27 = vadd.f32 %v416_v25, %v636_v26 }
 0x55d   :  { %v419_v28 = vmax.f32 %v417_v27, 0.0 }
 0x55f   :  { %511 = vmatmul.msk.f32.vlgmr.msrb.gmra.mxu1 %vm77_vm0, %v419_v28 }
 0x5dc   :  { %v440_v5 = vpop.f32.mrf.mxu1 }
 0x5dd   :  { %v441_v29 = vadd.f32 %v440_v5, %v644_v37 }
 0x5df   :  { %v443_v30 = vmax.f32 %v441_v29, 0.0 }
 0x5e1   :  { %512 = vmatmul.msk.f32.vlgmr.msrb.gmra.mxu2 %vm77_vm0, %v443_v30 }
 0x664   :  { %v464_v11 = vpop.f32.mrf.mxu2 }
 0x665   :  { %v465_v31 = vadd.f32 %v464_v11, %v649_v46 }
 0x667   :  { %v513_v32 = vmul.f32 -1.442695, %v465_v31 }
 0x669   :  { %526 = vpow2.f32 %v513_v32 }
 0x66f   :  { %v527_v18 = vpop.eup %526 }
 0x670   :  { %v470_v33 = vadd.f32 1.0, %v527_v18 }
 0x672   :  { %528 = vrcp.f32 %v470_v33  ;;  %v482_v36 = vand.u32 2147483648, %v470_v33  ;;  %v480_v39 = vand.u32 2147483647, %v470_v33  ;;  %vm476_vm12 = vweird.f32 %v470_v33 }
 0x674   :  { %v483_v37 = vor.u32 1.1754944e-38, %v482_v36  ;;  %vm481_vm14 = vcmp.eq.f32.partialorder %v480_v39, 8.507059e+37 }
 0x678   :  { %v529_v34 = vpop.eup %528 }
 0x679   :  { %v472_v35 = vmul.f32 %v529_v34, %v470_v33  ;;  %vm477_vm11 = vweird.f32 %v529_v34 }
 0x67a   :  { %vm478_vm13 = vmor %vm476_vm12, %vm477_vm11 }
 0x67b   :  { %v473_v26 = vsub.f32 1.0, %v472_v35 }
 0x67d   :  { %v474_v38 = vmul.f32 %v529_v34, %v473_v26 }
 0x67f   :  { %v475_v40 = vadd.f32 %v529_v34, %v474_v38 }
 0x681   :  { %v479_v41 = vsel %vm478_vm13, %v529_v34, %v475_v40 }
 0x682   :  { %v484_v42 = vsel %vm481_vm14, %v483_v37, %v479_v41 }
 0x683   :  { %488 = vst [vmem:[%s675_s3 + $0x2] sm:$0x1] %v484_v42 }
 0x684   :  { %493 = vsyncpa [#allocation3], 1 }
 0x685   :  { %494 = vsyncpa [#allocation5], 1 }

</bundles_post_ra>
